<compile_context>
chip_gen: v6e
topology: v6e:2x2x1
jax: 0.10.0
libtpu: 0.0.40
codegen_flags: <defaults>
</compile_context>

<pallas_src>
import math

import jax
import jax.numpy as jnp
from jax.experimental import pallas as pl
from jax.experimental.pallas import tpu as pltpu

_LANE = 128


def _rprelu_kernel(x_ref, p_ref, o_ref):
    # x_ref/o_ref: (tr, tc).  p_ref: (tr, 3) f32, VMEM-resident across the grid
    # (constant index_map); column 0 = move1, 1 = alpha, 2 = move2.
    x = x_ref[...].astype(jnp.float32)
    p = p_ref[...]
    m1 = p[:, 0:1]
    al = p[:, 1:2]
    m2 = p[:, 2:3]
    z = x - m1
    o_ref[...] = (jnp.where(z >= 0, z, al * z) + m2).astype(o_ref.dtype)


def _choose_tiles(rows, cols, C, itemsize, target_bytes=4 << 20):
    """Pick (tr, tc).

    tr: multiple of lcm(sublane, C) (so the C-periodic param pattern is the same
        for every row tile), or the full row extent for small inputs.
    tc: full width for small widths, otherwise a multiple of 128 so stores stay
        unmasked lane-dense vst (ragged tail block handled once by masking).
    """
    sublane = max(8, 32 // max(itemsize, 1))      # 8 f32, 16 bf16, 32 int8/fp8
    base = math.lcm(sublane, C)
    if base >= rows:
        base = rows                               # full-extent rows (rows = B*C, multiple of C)

    # Column tile.
    if cols <= _LANE or base * cols * itemsize <= target_bytes:
        tc = cols
    else:
        tc = max(_LANE, (target_bytes // (base * itemsize)) // _LANE * _LANE)
        tc = min(tc, max(_LANE, (cols // _LANE) * _LANE))

    # Row tile: as many 'base' row-groups as fit the block budget.
    per_row = tc * itemsize
    if base == rows:
        tr = rows
    else:
        max_tr = (rows // base) * base
        tr = max(base, min(max_tr, (target_bytes // per_row) // base * base))

    # Give v7x's two TensorCores (and the DMA pipeline) >= 2 grid steps when a
    # single large block would otherwise cover the whole array.
    if tr >= rows and tc >= cols and tr * tc * itemsize >= (1 << 20) and cols >= 2 * _LANE:
        tc = max(_LANE, (cols // 2) // _LANE * _LANE)

    return tr, tc


def rprelu(x_nchw, move1, alpha, move2):
    """x_nchw: (B, C, H, W); move1/alpha/move2: (C,).  Returns (B, C, H, W)."""
    B, C, H, W = x_nchw.shape
    dtype = x_nchw.dtype
    rows, cols = B * C, H * W

    # Free, contiguous view: row index = b*C + c, lanes = spatial positions.
    x_rows = x_nchw.reshape(rows, cols)

    tr, tc = _choose_tiles(rows, cols, C, jnp.dtype(dtype).itemsize)
    grid = (pl.cdiv(rows, tr), pl.cdiv(cols, tc))

    # One packed, C-periodic parameter pattern shared by every row tile:
    # tr % C == 0, so the channel of global row i*tr + j is simply j % C.
    # Kept in f32 to match PyTorch parameter precision.
    params = jnp.tile(
        jnp.stack([move1, alpha, move2], axis=-1).astype(jnp.float32),  # (C, 3)
        (tr // C, 1),
    )  # (tr, 3)

    out_rows = pl.pallas_call(
        _rprelu_kernel,
        out_shape=jax.ShapeDtypeStruct((rows, cols), dtype),
        grid_spec=pltpu.PrefetchScalarGridSpec(
            num_scalar_prefetch=0,
            grid=grid,
            in_specs=[
                pl.BlockSpec((tr, tc), lambda i, j: (i, j)),  # x tile (lane-dense)
                pl.BlockSpec((tr, 3), lambda i, j: (0, 0)),   # resident packed params
            ],
            out_specs=pl.BlockSpec((tr, tc), lambda i, j: (i, j)),
        ),
        compiler_params=pltpu.CompilerParams(
            dimension_semantics=("parallel", "parallel"),
            vmem_limit_bytes=48 << 20,  # > v5e/v6e scoped defaults, headroom under v7x 64 MiB
        ),
    )(x_rows, params)

    return out_rows.reshape(B, C, H, W)
    # TODO(synk): for production, fuse this HBM-bound elementwise epilogue into
    # the producing conv/matmul kernel to drop one full read+write of x.


def rprelu_reference(x_nchw, move1, alpha, move2):
    m1 = move1.reshape(1, -1, 1, 1)
    al = alpha.reshape(1, -1, 1, 1)
    m2 = move2.reshape(1, -1, 1, 1)
    z = x_nchw - m1
    return jnp.where(z >= 0, z, al * z) + m2


if __name__ == "__main__":
    key = jax.random.PRNGKey(0)
    B, C, H, W = 2, 4, 16, 16

    kx, k1, k2, k3 = jax.random.split(key, 4)
    x = jax.random.normal(kx, (B, C, H, W), dtype=jnp.float32)

    # PyTorch defaults: move1=0, move2=0, prelu alpha=0.25; perturb
    # deterministically so per-channel broadcast paths are exercised.
    move1 = 0.1 * jax.random.normal(k1, (C,), dtype=jnp.float32)
    alpha = jnp.full((C,), 0.25, dtype=jnp.float32) + 0.05 * jax.random.normal(
        k2, (C,), dtype=jnp.float32
    )
    move2 = 0.1 * jax.random.normal(k3, (C,), dtype=jnp.float32)

    out = rprelu(x, move1, alpha, move2)
    out = jax.block_until_ready(out)

    ref = rprelu_reference(x, move1, alpha, move2)
    assert out.shape == (B, C, H, W)
    assert jnp.allclose(out, ref, atol=1e-6, rtol=1e-6), "mismatch vs reference"

    print("KERNEL_OK")
</pallas_src>

<mosaic_0001>
module attributes {stable_mosaic.version = 11 : i64} {
  func.func @_rprelu_kernel(%arg0: i32, %arg1: i32, %arg2: memref<8x256xf32, #tpu.memory_space<vmem>>, %arg3: memref<8x3xf32, #tpu.memory_space<vmem>>, %arg4: memref<8x256xf32, #tpu.memory_space<vmem>>) attributes {dimension_semantics = [#tpu.dimension_semantics<parallel>, #tpu.dimension_semantics<parallel>], iteration_bounds = array<i64: 1, 1>, scalar_prefetch = 0 : i64, scratch_operands = 0 : i64, tpu.core_type = #tpu.core_type<tc>, window_params = [{transform_indices = @transform_0, window_bounds = array<i64: 8, 256>}, {pipeline_mode = #tpu.pipeline_mode<synchronous>, transform_indices = @transform_1, window_bounds = array<i64: 8, 3>}, {transform_indices = @transform_2, window_bounds = array<i64: 8, 256>}]} {
    %c0 = arith.constant 0 : index
    %c0_0 = arith.constant 0 : index
    %0 = vector.load %arg2[%c0, %c0_0] : memref<8x256xf32, #tpu.memory_space<vmem>>, vector<8x256xf32>
    %c0_1 = arith.constant 0 : index
    %c0_2 = arith.constant 0 : index
    %1 = vector.load %arg3[%c0_1, %c0_2] : memref<8x3xf32, #tpu.memory_space<vmem>>, vector<8x3xf32>
    %2 = vector.extract_strided_slice %1 {offsets = [0, 0], sizes = [8, 1], strides = [1, 1]} : vector<8x3xf32> to vector<8x1xf32>
    %3 = vector.extract_strided_slice %1 {offsets = [0, 1], sizes = [8, 1], strides = [1, 1]} : vector<8x3xf32> to vector<8x1xf32>
    %4 = vector.extract_strided_slice %1 {offsets = [0, 2], sizes = [8, 1], strides = [1, 1]} : vector<8x3xf32> to vector<8x1xf32>
    %5 = vector.broadcast %2 : vector<8x1xf32> to vector<8x256xf32>
    %6 = arith.subf %0, %5 : vector<8x256xf32>
    %cst = arith.constant 0.000000e+00 : f32
    %7 = vector.broadcast %cst : f32 to vector<8x256xf32>
    %8 = arith.cmpf oge, %6, %7 : vector<8x256xf32>
    %9 = vector.broadcast %3 : vector<8x1xf32> to vector<8x256xf32>
    %10 = arith.mulf %9, %6 : vector<8x256xf32>
    %11 = arith.select %8, %6, %10 : vector<8x256xi1>, vector<8x256xf32>
    %12 = vector.broadcast %4 : vector<8x1xf32> to vector<8x256xf32>
    %13 = arith.addf %11, %12 : vector<8x256xf32>
    %c0_3 = arith.constant 0 : index
    %c0_4 = arith.constant 0 : index
    %14 = vector.load %arg4[%c0_3, %c0_4] : memref<8x256xf32, #tpu.memory_space<vmem>>, vector<8x256xf32>
    tpu.vector_store %arg4[%c0_3, %c0_4], %13 {strides = array<i32>} : memref<8x256xf32, #tpu.memory_space<vmem>>, vector<8x256xf32>,
    return
  }
  func.func @transform_0(%arg0: i32, %arg1: i32) -> (i32, i32) {
    %c0_i32 = arith.constant 0 : i32
    return %arg0, %arg1 : i32, i32
  }
  func.func @transform_1(%arg0: i32, %arg1: i32) -> (i32, i32) {
    %c0_i32 = arith.constant 0 : i32
    %c0_i32_0 = arith.constant 0 : i32
    %c0_i32_1 = arith.constant 0 : i32
    return %c0_i32, %c0_i32_0 : i32, i32
  }
  func.func @transform_2(%arg0: i32, %arg1: i32) -> (i32, i32) {
    %c0_i32 = arith.constant 0 : i32
    return %arg0, %arg1 : i32, i32
  }
}

</mosaic_0001>

<bundles_post_ra>
// kernel: tpu_custom_call.1
= control target key start
LH: loop header
LB: loop body
LE: loop exit
PB: predicated region body
PF: predicated region fallthrough
CT: control target
= control target key end

     0   :  { %7 = vsyncpa [#allocation3], 0  ;;  %s149_s0 = inlined_call_operand.hbm [shape: f32[8,256], index: 0, kind: input, shape index: {}]   ;;  %s150_s1 = inlined_call_operand.vmem [shape: f32[8,3], index: 1, kind: input, shape index: {}]   ;;  %s151_s2 = inlined_call_operand.hbm [shape: f32[8,256], index: 2, kind: output, shape index: {}]  }
   0x1   :  { %8 = vsyncpa [#allocation4], 0  ;;  %s120_s9 = smov [#allocation2]  }
   0x2   :  { %s15_s10 = sshll.u32 %s120_s9, 4  ;;  %s16_s10 = int_to_ptr.vmem [resolvable:$true] %s15_s10 }
   0x3   :  { %s84_s11 = scalar_lea.vmem %s16_s10, 256  ;;  %p89_p1 = scmp.lt.s32.totalorder %s16_s10, %s16_s10 }
   0x4   :  { %p85_p0 = scmp.ne.s32.totalorder %s16_s10, %s84_s11  ;;  %p90_p2 = scmp.lt.s32.totalorder %s84_s11, %s84_s11 }
   0x6   :  { %p91_p3 = por %p90_p2, %p89_p1 }
   0x8   :  { %p92_p4 = pnand %p91_p3, %p85_p0 }
   0xa   :  { %95 = shalt.err (!%p92_p4)
}
   0xb   :  { %18 = dma.hbm_to_vmem [thread:$0]  %s149_s0, 256, %s16_s10, [#allocation3]  }
   0xc   :  { %116 = dma.done.wait [#allocation3], 256  }
   0xd   :  { %117 = vsyncadd [#allocation3], 4294967040  ;;  %v121_v0 = vmov 0   ;;  %v122_v1 = vmov 2   ;;  %v26_v2 = vld [vmem:[%s150_s1] sm:$0xff]  ;;  %v123_v3 = vmov 1  }
   0xe   :  { %72 = vset.pattern.permute.xlu0 %v121_v0  ;;  %74 = vset.pattern.permute.xlu1 %v122_v1  ;;  %v24_v5 = vld [vmem:[#allocation2] sm:$0xff]  ;;  %v25_v6 = vld [vmem:[#allocation2 + $0x8] sm:$0xff]  ;;  %s124_s0 = smov [#allocation5]  }
   0xf   :  { %29 = vperm.xlu0 %72, %v26_v2   ;;  %45 = vperm.xlu1 %74, %v26_v2   ;;  %s58_s16 = sshll.u32 %s124_s0, 4  ;;  %s59_s16 = int_to_ptr.vmem [resolvable:$true] %s58_s16 }
  0x10   :  { %s96_s1 = scalar_lea.vmem %s59_s16, 256  ;;  %p101_p6 = scmp.lt.s32.totalorder %s59_s16, %s59_s16 }
  0x11   :  { %p97_p5 = scmp.ne.s32.totalorder %s59_s16, %s96_s1  ;;  %p102_p7 = scmp.lt.s32.totalorder %s96_s1, %s96_s1 }
  0x13   :  { %73 = vset.pattern.permute.xlu0 %v123_v3  ;;  %p103_p8 = por %p102_p7, %p101_p6 }
  0x14   :  { %37 = vperm.xlu0 %73, %v26_v2  }
  0x15   :  { %p104_p9 = pnand %p103_p8, %p97_p5 }
  0x18   :  { %75 = vset.pattern.permute.xlu0 %v122_v1 }
  0x8a   :  { %v30_v4 = vpop.permute.xlu0 %29  ;;  %v46_v12 = vpop.permute.xlu1 %45 }
  0x8b   :  { %v32_v7 = vsub.f32 %v24_v5, %v30_v4  ;;  %v33_v8 = vsub.f32 %v25_v6, %v30_v4 }
  0x8d   :  { %vm34_vm0 = vcmp.ge.f32.partialorder %v32_v7, 0.0  ;;  %vm35_vm1 = vcmp.ge.f32.partialorder %v33_v8, 0.0 }
  0x8f   :  { %v38_v9 = vpop.permute.xlu0 %37 }
  0x90   :  { %v40_v10 = vmul.f32 %v38_v9, %v32_v7  ;;  %v41_v11 = vmul.f32 %v38_v9, %v33_v8 }
  0x92   :  { %v42_v13 = vsel %vm34_vm0, %v32_v7, %v40_v10  ;;  %v43_v14 = vsel %vm35_vm1, %v33_v8, %v41_v11 }
  0x93   :  { %v48_v15 = vadd.f32 %v46_v12, %v42_v13  ;;  %v49_v16 = vadd.f32 %v46_v12, %v43_v14 }
  0x95   :  { %50 = vst [vmem:[#allocation5] sm:$0xff] %v48_v15  ;;  %51 = vst [vmem:[#allocation5 + $0x8] sm:$0xff] %v49_v16 }
  0x96   :  { %107 = shalt.err (!%p104_p9)
}
  0x97   :  { %61 = dma.vmem_to_hbm [thread:$0]  %s59_s16, 256, %s151_s2, [#allocation4]  }
  0x98   :  { %118 = dma.done.wait [#allocation4], 256  }
  0x99   :  { %119 = vsyncadd [#allocation4], 4294967040 }
  0x9a   :  { %65 = vsyncpa [#allocation3], 1 }
  0x9b   :  { %66 = vsyncpa [#allocation4], 1 }

</bundles_post_ra>
